<compile_context>
chip_gen: v6e
topology: v6e:2x2x1
jax: 0.10.0
libtpu: 0.0.40
codegen_flags: <defaults>
</compile_context>

<pallas_src>
import functools

import jax
import jax.numpy as jnp
from jax.experimental import pallas as pl
from jax.experimental.pallas import tpu as pltpu


def _round_up(v: int, m: int) -> int:
    return ((v + m - 1) // m) * m


def _qfl_kernel(x_ref, t_ref, s_ref, out_ref, *, beta: float, num_classes: int,
                fold: int, width: int, nf_valid: int, last_w: int,
                tm: int, chunk: int):
    """One grid step over a (tm, W) folded-logits tile.

    x_ref : (tm, W)   logits (caller dtype), W = fold * num_classes
    t_ref : (tm, fold) f32, absolute target lane within the folded row, or -1
    s_ref : (tm, fold) f32, quality score per original row
    out_ref: (8, W)   f32 partial sum (summed over row groups of this tile)
    """
    i = pl.program_id(0)
    W, f, C = width, fold, num_classes

    # Loop-invariant index helpers (no integer division anywhere).
    lane = jax.lax.broadcasted_iota(jnp.int32, (1, W), 1)        # 0..W-1
    lanef = lane.astype(jnp.float32)

    if f > 1:
        # Expansion matrix: expand[k, j] = 1.0 iff lane j belongs to sub-row k
        # (i.e. k*C <= j < (k+1)*C).  Used to broadcast per-original-row values to
        # their C lanes with one small MXU matmul.
        ek = jax.lax.broadcasted_iota(jnp.int32, (f, W), 0) * C
        ej = jax.lax.broadcasted_iota(jnp.int32, (f, W), 1)
        expand = ((ej >= ek) & (ej < ek + C)).astype(jnp.float32)

    def body(c, acc):
        r0 = pl.multiple_of(c * chunk, chunk)
        x = x_ref[pl.ds(r0, chunk), :].astype(jnp.float32)       # (chunk, W)
        t_rows = t_ref[pl.ds(r0, chunk), :]                      # (chunk, f)
        s_rows = s_ref[pl.ds(r0, chunk), :]                      # (chunk, f)

        if f > 1:
            # Broadcast per-row [target lane, score] to lanes.  Values are exact:
            # target lanes are small integers (< W <= 128 here) and precision=HIGHEST
            # keeps the f32 scores bit-exact through the MXU.
            t_lane = jnp.dot(t_rows, expand, preferred_element_type=jnp.float32,
                             precision=jax.lax.Precision.HIGHEST)
            s_lane = jnp.dot(s_rows, expand, preferred_element_type=jnp.float32,
                             precision=jax.lax.Precision.HIGHEST)
        else:
            t_lane, s_lane = t_rows, s_rows                      # (chunk, 1) broadcast

        # Unified target tensor: y == score at the positive row's target lane, 0
        # elsewhere.  loss = BCE(x, y) * |y - sigmoid(x)|^beta reproduces both
        # branches of the reference exactly (y = 0 gives BCE(x,0) * p^beta).
        match = jnp.abs(lanef - t_lane) < 0.5                    # robust int compare
        y = jnp.where(match, s_lane, 0.0)

        # One shared exp per element; exact sigmoid (parity with the torch module).
        e = jnp.exp(-jnp.abs(x))
        softplus = jnp.log1p(e)
        inv = 1.0 / (1.0 + e)
        p = jnp.where(x >= 0.0, inv, e * inv)                    # sigmoid(x)
        bce = jnp.maximum(x, 0.0) - x * y + softplus             # BCEwithLogits(x, y)
        d = y - p
        if beta == 2.0:
            w = d * d                                            # even power, no abs
        else:
            # Forward-only: jnp.power underflow (|d| -> 0) still yields 0 here.
            w = jnp.power(jnp.abs(d), beta)
        loss = bce * w

        # Mask folded rows that are padding / past the end of the array:
        #   rows <  nf_valid - 1 : fully valid
        #   row  == nf_valid - 1 : only the first `last_w` lanes are valid
        #   rows >= nf_valid     : invalid (ragged last grid block)
        row_f = i * tm + r0 + jax.lax.broadcasted_iota(jnp.int32, (chunk, 1), 0)
        valid = (row_f < nf_valid - 1) | ((row_f < nf_valid) & (lane < last_w))
        loss = jnp.where(valid, loss, 0.0)

        # (chunk, W) -> (8, W): free sublane-split reshape + pure vreg adds.
        return acc + loss.reshape(chunk // 8, 8, W).sum(axis=0)

    acc = jax.lax.fori_loop(0, tm // chunk, body, jnp.zeros((8, W), jnp.float32))
    out_ref[...] = acc


def quality_focal_loss_pallas(inputs, targets, scores, *, beta=2.0,
                              reduction="mean", loss_weight=1.0):
    """inputs: (N, C) float logits; targets: (N,) labels (C == background);
    scores: (N,) float quality scores."""
    N, C = inputs.shape
    assert N >= 1 and C >= 1

    # ---- lane folding: pack f original rows side by side so the row width is
    #      (close to) 128 lanes when C < 128 ----
    f = max(1, 128 // C)
    W = f * C
    Np = _round_up(N, f)              # tiny pad (< f rows) only so the fold reshapes
    Nf = Np // f

    # Per-original-row side info: absolute target lane within the folded row
    # (or -1 for background / invalid), and the quality score.  Targets must be
    # integer-valued (< 2^24) since they travel as f32.
    pos = (targets >= 0) & (targets < C)
    tcls = jnp.where(pos, targets.astype(jnp.int32), -1)
    s = scores.astype(jnp.float32)
    x = inputs
    if Np != N:
        x = jnp.pad(x, ((0, Np - N), (0, 0)))
        tcls = jnp.pad(tcls, (0, Np - N), constant_values=-1)
        s = jnp.pad(s, (0, Np - N))
    xf = x.reshape(Nf, W)                                     # pure row-major reshape
    t2 = tcls.reshape(Nf, f)
    t_fold = jnp.where(t2 >= 0, t2 + jnp.arange(f, dtype=jnp.int32) * C,
                       -1).astype(jnp.float32)                # (Nf, f) target lane
    s_fold = s.reshape(Nf, f)                                 # (Nf, f)

    # ---- tile / chunk selection ----
    itemsize = jnp.dtype(inputs.dtype).itemsize
    sub_align = 8 if itemsize >= 4 else (16 if itemsize == 2 else 32)
    Nfa = _round_up(Nf, sub_align)

    # chunk: rows per inner-loop iteration (~32 KiB of f32 temps bounds vregs)
    chunk = ((32 * 1024) // (W * 4)) // sub_align * sub_align
    chunk = max(sub_align, min(256, chunk))
    if Nfa <= chunk:
        chunk = Nfa
        tm = Nfa
    else:
        # tm: folded rows per grid step, ~2 MiB of f32 logits per block
        tm = ((2 << 20) // (W * 4)) // chunk * chunk
        tm = max(chunk, min(tm, 8192))
        if Nfa <= 2 * tm:
            # Split as evenly as possible so both TensorCores get work on v7x.
            tm = max(chunk, _round_up((Nfa + 1) // 2, chunk))
    num_tiles = pl.cdiv(Nf, tm)
    last_w = W - (Np - N) * C          # valid lanes in the last real folded row

    kernel = functools.partial(
        _qfl_kernel, beta=float(beta), num_classes=C, fold=f, width=W,
        nf_valid=Nf, last_w=last_w, tm=tm, chunk=chunk)

    partials = pl.pallas_call(
        kernel,
        out_shape=jax.ShapeDtypeStruct((num_tiles * 8, W), jnp.float32),
        grid_spec=pltpu.PrefetchScalarGridSpec(
            num_scalar_prefetch=0,
            grid=(num_tiles,),
            in_specs=[
                pl.BlockSpec((tm, W), lambda i: (i, 0)),   # folded logits
                pl.BlockSpec((tm, f), lambda i: (i, 0)),   # target lanes
                pl.BlockSpec((tm, f), lambda i: (i, 0)),   # scores
            ],
            out_specs=pl.BlockSpec((8, W), lambda i: (i, 0)),
        ),
        compiler_params=pltpu.CompilerParams(
            dimension_semantics=("parallel",)),            # megacore-friendly on v7x
    )(xf, t_fold, s_fold)

    total = jnp.sum(partials)
    if reduction == "mean":
        out = total / N
    elif reduction == "sum":
        out = total
    else:
        # TODO(synk): reduction='none' returns a per-sample vector; not lowered here.
        raise NotImplementedError("only reduction='mean' or 'sum' is supported")
    return loss_weight * out


def _quality_focal_loss_ref(inputs, targets, scores, beta=2.0):
    """Pure-JAX reference of the PyTorch forward (reduction='mean')."""
    x = inputs.astype(jnp.float32)
    p = jax.nn.sigmoid(x)
    bce0 = jnp.maximum(x, 0.0) + jnp.log1p(jnp.exp(-jnp.abs(x)))
    loss = bce0 * p ** beta
    N, C = x.shape
    t = targets
    s = scores.astype(jnp.float32)[:, None]
    col = jnp.arange(C)[None, :]
    pos_mask = ((t >= 0) & (t < C))[:, None] & (col == t.astype(jnp.int32)[:, None])
    bce_s = jnp.maximum(x, 0.0) - x * s + jnp.log1p(jnp.exp(-jnp.abs(x)))
    pos_loss = bce_s * jnp.abs(s - p) ** beta
    loss = jnp.where(pos_mask, pos_loss, loss)
    return jnp.mean(jnp.sum(loss, axis=1))


if __name__ == "__main__":
    key = jax.random.PRNGKey(0)
    k1, k2, k3 = jax.random.split(key, 3)

    N, C = 64, 16   # samples x classes (bg_class_ind == C)
    inputs = jax.random.normal(k1, (N, C), dtype=jnp.float32) * 2.0
    # targets in [0, C] — value C means background (no positive column for that row)
    targets = jax.random.randint(k2, (N,), 0, C + 1, dtype=jnp.int32)
    scores = jax.random.uniform(k3, (N,), dtype=jnp.float32)

    out = quality_focal_loss_pallas(inputs, targets, scores,
                                    beta=2.0, reduction="mean", loss_weight=1.0)
    out = jax.block_until_ready(out)

    ref = _quality_focal_loss_ref(inputs, targets, scores, beta=2.0)
    # Exact sigmoid in-kernel now; remaining differences are summation-order level.
    assert jnp.allclose(out, ref, atol=1e-3, rtol=1e-3), (out, ref)

    print("KERNEL_OK")
</pallas_src>

<mosaic_0001>
module attributes {stable_mosaic.version = 11 : i64} {
  func.func @_qfl_kernel(%arg0: i32, %arg1: memref<8x128xf32, #tpu.memory_space<vmem>>, %arg2: memref<8x8xf32, #tpu.memory_space<vmem>>, %arg3: memref<8x8xf32, #tpu.memory_space<vmem>>, %arg4: memref<8x128xf32, #tpu.memory_space<vmem>>) attributes {dimension_semantics = [#tpu.dimension_semantics<parallel>], iteration_bounds = array<i64: 1>, scalar_prefetch = 0 : i64, scratch_operands = 0 : i64, tpu.core_type = #tpu.core_type<tc>, window_params = [{transform_indices = @transform_0, window_bounds = array<i64: 8, 128>}, {transform_indices = @transform_1, window_bounds = array<i64: 8, 8>}, {transform_indices = @transform_2, window_bounds = array<i64: 8, 8>}, {transform_indices = @transform_3, window_bounds = array<i64: 8, 128>}]} {
    %0 = tpu.iota {dimensions = array<i32: 1>} : vector<1x128xi32>
    %1 = arith.sitofp %0 : vector<1x128xi32> to vector<1x128xf32>
    %2 = tpu.iota {dimensions = array<i32: 0>} : vector<8x128xi32>
    %c16_i32 = arith.constant 16 : i32
    %3 = vector.broadcast %c16_i32 : i32 to vector<8x128xi32>
    %4 = arith.muli %2, %3 : vector<8x128xi32>
    %5 = tpu.iota {dimensions = array<i32: 1>} : vector<8x128xi32>
    %6 = arith.cmpi sge, %5, %4 : vector<8x128xi32>
    %c16_i32_0 = arith.constant 16 : i32
    %7 = vector.broadcast %c16_i32_0 : i32 to vector<8x128xi32>
    %8 = arith.addi %4, %7 : vector<8x128xi32>
    %9 = arith.cmpi slt, %5, %8 : vector<8x128xi32>
    %10 = arith.andi %6, %9 : vector<8x128xi1>
    %11 = arith.extui %10 : vector<8x128xi1> to vector<8x128xi32>
    %12 = arith.sitofp %11 : vector<8x128xi32> to vector<8x128xf32>
    %cst = arith.constant 0.000000e+00 : f32
    %13 = vector.broadcast %cst : f32 to vector<8x128xf32>
    %c0_i32 = arith.constant 0 : i32
    %c8_i32 = arith.constant 8 : i32
    %14 = arith.muli %c0_i32, %c8_i32 : i32
    %15 = tpu.assume_multiple %14, 8 : i32
    %16 = arith.index_cast %15 : i32 to index
    %c0 = arith.constant 0 : index
    %17 = vector.load %arg1[%16, %c0] : memref<8x128xf32, #tpu.memory_space<vmem>>, vector<8x128xf32>
    %18 = arith.index_cast %15 : i32 to index
    %c0_1 = arith.constant 0 : index
    %19 = vector.load %arg2[%18, %c0_1] : memref<8x8xf32, #tpu.memory_space<vmem>>, vector<8x8xf32>
    %20 = arith.index_cast %15 : i32 to index
    %c0_2 = arith.constant 0 : index
    %21 = vector.load %arg3[%20, %c0_2] : memref<8x8xf32, #tpu.memory_space<vmem>>, vector<8x8xf32>
    %cst_3 = arith.constant dense<0.000000e+00> : vector<8x128xf32>
    %22 = tpu.matmul %19, %12, %cst_3 {dimension_numbers = #tpu.dot_dimension_numbers<[1], [0], [0], [1], [0, 0, 1, 1], [], []>, precision = #tpu.contract_precision<fp32>} : vector<8x8xf32>, vector<8x128xf32>, vector<8x128xf32> -> vector<8x128xf32>
    %cst_4 = arith.constant dense<0.000000e+00> : vector<8x128xf32>
    %23 = tpu.matmul %21, %12, %cst_4 {dimension_numbers = #tpu.dot_dimension_numbers<[1], [0], [0], [1], [0, 0, 1, 1], [], []>, precision = #tpu.contract_precision<fp32>} : vector<8x8xf32>, vector<8x128xf32>, vector<8x128xf32> -> vector<8x128xf32>
    %24 = vector.broadcast %1 : vector<1x128xf32> to vector<8x128xf32>
    %25 = arith.subf %24, %22 : vector<8x128xf32>
    %26 = math.absf %25 : vector<8x128xf32>
    %cst_5 = arith.constant 5.000000e-01 : f32
    %27 = vector.broadcast %cst_5 : f32 to vector<8x128xf32>
    %28 = arith.cmpf olt, %26, %27 : vector<8x128xf32>
    %cst_6 = arith.constant 0.000000e+00 : f32
    %29 = vector.broadcast %cst_6 : f32 to vector<8x128xf32>
    %30 = arith.select %28, %23, %29 : vector<8x128xi1>, vector<8x128xf32>
    %31 = math.absf %17 : vector<8x128xf32>
    %cst_7 = arith.constant 0.000000e+00 : f32
    %32 = vector.broadcast %cst_7 : f32 to vector<8x128xf32>
    %33 = arith.subf %32, %31 : vector<8x128xf32>
    %34 = math.exp %33 : vector<8x128xf32>
    %35 = math.log1p %34 : vector<8x128xf32>
    %cst_8 = arith.constant 1.000000e+00 : f32
    %36 = vector.broadcast %cst_8 : f32 to vector<8x128xf32>
    %37 = arith.addf %36, %34 : vector<8x128xf32>
    %cst_9 = arith.constant 1.000000e+00 : f32
    %38 = vector.broadcast %cst_9 : f32 to vector<8x128xf32>
    %39 = arith.divf %38, %37 : vector<8x128xf32>
    %cst_10 = arith.constant 0.000000e+00 : f32
    %40 = vector.broadcast %cst_10 : f32 to vector<8x128xf32>
    %41 = arith.cmpf oge, %17, %40 : vector<8x128xf32>
    %42 = arith.mulf %34, %39 : vector<8x128xf32>
    %43 = arith.select %41, %39, %42 : vector<8x128xi1>, vector<8x128xf32>
    %cst_11 = arith.constant 0.000000e+00 : f32
    %44 = vector.broadcast %cst_11 : f32 to vector<8x128xf32>
    %45 = arith.maximumf %17, %44 : vector<8x128xf32>
    %46 = arith.mulf %17, %30 : vector<8x128xf32>
    %47 = arith.subf %45, %46 : vector<8x128xf32>
    %48 = arith.addf %47, %35 : vector<8x128xf32>
    %49 = arith.subf %30, %43 : vector<8x128xf32>
    %50 = arith.mulf %49, %49 : vector<8x128xf32>
    %51 = arith.mulf %48, %50 : vector<8x128xf32>
    %c8_i32_12 = arith.constant 8 : i32
    %52 = arith.muli %arg0, %c8_i32_12 : i32
    %53 = arith.addi %52, %15 : i32
    %54 = tpu.iota {dimensions = array<i32: 0>} : vector<8x1xi32>
    %55 = vector.broadcast %53 : i32 to vector<8x1xi32>
    %56 = arith.addi %55, %54 : vector<8x1xi32>
    %c7_i32 = arith.constant 7 : i32
    %57 = vector.broadcast %c7_i32 : i32 to vector<8x1xi32>
    %58 = arith.cmpi slt, %56, %57 : vector<8x1xi32>
    %c8_i32_13 = arith.constant 8 : i32
    %59 = vector.broadcast %c8_i32_13 : i32 to vector<8x1xi32>
    %60 = arith.cmpi slt, %56, %59 : vector<8x1xi32>
    %c128_i32 = arith.constant 128 : i32
    %61 = vector.broadcast %c128_i32 : i32 to vector<1x128xi32>
    %62 = arith.cmpi slt, %0, %61 : vector<1x128xi32>
    %63 = vector.broadcast %60 : vector<8x1xi1> to vector<8x128xi1>
    %64 = vector.broadcast %62 : vector<1x128xi1> to vector<8x128xi1>
    %65 = arith.andi %63, %64 : vector<8x128xi1>
    %66 = vector.broadcast %58 : vector<8x1xi1> to vector<8x128xi1>
    %67 = arith.ori %66, %65 : vector<8x128xi1>
    %cst_14 = arith.constant 0.000000e+00 : f32
    %68 = vector.broadcast %cst_14 : f32 to vector<8x128xf32>
    %69 = arith.select %67, %51, %68 : vector<8x128xi1>, vector<8x128xf32>
    %70 = vector.shape_cast %69 : vector<8x128xf32> to vector<1x8x128xf32>
    %cst_15 = arith.constant dense<0.000000e+00> : vector<8x128xf32>
    %71 = vector.multi_reduction <add>, %70, %cst_15 [0] : vector<1x8x128xf32> to vector<8x128xf32>
    %72 = arith.addf %13, %71 : vector<8x128xf32>
    %c1_i32 = arith.constant 1 : i32
    %c0_16 = arith.constant 0 : index
    %c0_17 = arith.constant 0 : index
    %73 = vector.load %arg4[%c0_16, %c0_17] : memref<8x128xf32, #tpu.memory_space<vmem>>, vector<8x128xf32>
    tpu.vector_store %arg4[%c0_16, %c0_17], %72 {strides = array<i32>} : memref<8x128xf32, #tpu.memory_space<vmem>>, vector<8x128xf32>,
    return
  }
  func.func @transform_0(%arg0: i32) -> (i32, i32) {
    %c0_i32 = arith.constant 0 : i32
    %c0_i32_0 = arith.constant 0 : i32
    return %arg0, %c0_i32 : i32, i32
  }
  func.func @transform_1(%arg0: i32) -> (i32, i32) {
    %c0_i32 = arith.constant 0 : i32
    %c0_i32_0 = arith.constant 0 : i32
    return %arg0, %c0_i32 : i32, i32
  }
  func.func @transform_2(%arg0: i32) -> (i32, i32) {
    %c0_i32 = arith.constant 0 : i32
    %c0_i32_0 = arith.constant 0 : i32
    return %arg0, %c0_i32 : i32, i32
  }
  func.func @transform_3(%arg0: i32) -> (i32, i32) {
    %c0_i32 = arith.constant 0 : i32
    %c0_i32_0 = arith.constant 0 : i32
    return %arg0, %c0_i32 : i32, i32
  }
}

</mosaic_0001>

<bundles_post_ra>
// kernel: tpu_custom_call.1
= control target key start
LH: loop header
LB: loop body
LE: loop exit
PB: predicated region body
PF: predicated region fallthrough
CT: control target
= control target key end

     0   :  { %8 = vsyncpa [#allocation3], 0  ;;  %s1324_s0 = inlined_call_operand.hbm [shape: f32[8,128], index: 0, kind: input, shape index: {}]   ;;  %s1325_s1 = inlined_call_operand.hbm [shape: f32[8,8], index: 1, kind: input, shape index: {}]   ;;  %s1326_s2 = inlined_call_operand.hbm [shape: f32[8,8], index: 2, kind: input, shape index: {}]   ;;  %s1327_s3 = inlined_call_operand.hbm [shape: f32[8,128], index: 3, kind: output, shape index: {}]  }
   0x1   :  { %9 = vsyncpa [#allocation6], 0 }
   0x2   :  { %10 = vsyncpa [#allocation4], 0  ;;  %s1219_s12 = smov [#allocation5]   ;;  %s1220_s14 = smov [#allocation2]  }
   0x3   :  { %s27_s13 = sshll.u32 %s1219_s12, 4  ;;  %s17_s15 = sshll.u32 %s1220_s14, 4  ;;  %s28_s13 = int_to_ptr.vmem [resolvable:$true] %s27_s13  ;;  %s18_s15 = int_to_ptr.vmem [resolvable:$true] %s17_s15 }
   0x4   :  { %s1141_s16 = scalar_lea.vmem %s28_s13, 128  ;;  %p1146_p1 = scmp.lt.s32.totalorder %s28_s13, %s28_s13 }
   0x5   :  { %p1142_p0 = scmp.ne.s32.totalorder %s28_s13, %s1141_s16  ;;  %p1147_p2 = scmp.lt.s32.totalorder %s1141_s16, %s1141_s16 }
   0x7   :  { %p1148_p3 = por %p1147_p2, %p1146_p1 }
   0x9   :  { %p1149_p4 = pnand %p1148_p3, %p1142_p0 }
   0xb   :  { %1152 = shalt.err (!%p1149_p4)
}
   0xc   :  { %30 = dma.hbm_to_vmem [thread:$0]  %s1325_s1, 128, %s28_s13, [#allocation6]  }
   0xd   :  { %s1161_s19 = scalar_lea.vmem %s18_s15, 128  ;;  %p1166_p6 = scmp.lt.s32.totalorder %s18_s15, %s18_s15 }
   0xe   :  { %p1162_p5 = scmp.ne.s32.totalorder %s18_s15, %s1161_s19  ;;  %p1167_p7 = scmp.lt.s32.totalorder %s1161_s19, %s1161_s19 }
  0x10   :  { %p1168_p8 = por %p1167_p7, %p1166_p6 }
  0x12   :  { %p1169_p9 = pnand %p1168_p8, %p1162_p5 }
  0x14   :  { %1172 = shalt.err (!%p1169_p9)
}
  0x15   :  { %20 = dma.hbm_to_vmem [thread:$0]  %s1324_s0, 128, %s18_s15, [#allocation3]  }
  0x16   :  { %s1221_s22 = smov [#allocation7]  }
  0x17   :  { %s37_s23 = sshll.u32 %s1221_s22, 4  ;;  %s38_s23 = int_to_ptr.vmem [resolvable:$true] %s37_s23 }
  0x18   :  { %s1181_s24 = scalar_lea.vmem %s38_s23, 128  ;;  %p1186_p11 = scmp.lt.s32.totalorder %s38_s23, %s38_s23 }
  0x19   :  { %p1182_p10 = scmp.ne.s32.totalorder %s38_s23, %s1181_s24  ;;  %p1187_p12 = scmp.lt.s32.totalorder %s1181_s24, %s1181_s24 }
  0x1b   :  { %p1188_p13 = por %p1187_p12, %p1186_p11 }
  0x1d   :  { %p1189_p0 = pnand %p1188_p13, %p1182_p10 }
  0x1f   :  { %1192 = shalt.err (!%p1189_p0)
}
  0x20   :  { %40 = dma.hbm_to_vmem [thread:$0]  %s1326_s2, 128, %s38_s23, [#allocation6]  }
  0x21   :  { %1213 = dma.done.wait [#allocation3], 128  }
  0x22   :  { %1214 = vsyncadd [#allocation3], 4294967168 }
  0x23   :  { %1215 = dma.done.wait [#allocation6], 256  }
  0x24   :  { %1216 = vsyncadd [#allocation6], 4294967040  ;;  %v50_v0 = vlaneseq  ;;  %v1222_v1 = vmov 0.0   ;;  %vm1223_vm0 = vmmov 0   ;;  %vm65_vm1 = vcmask 64512   ;;  %v63_v6 = vld [vmem:[#allocation5] sm:$0xff] }
  0x25   :  { %1060 = vmatprep.subr.mxu0 %v1222_v1  ;;  %1062 = vmatprep.mubr.msk.f32.mxu0 %vm1223_vm0, %v1222_v1  ;;  %v64_v7 = vld [vmem:[#allocation7] sm:$0xff]  ;;  %v67_v8 = vsel %vm65_vm1, %v63_v6, 0  ;;  %v1224_v12 = vmov 1.0   ;;  %v1314_v27 = vld [vmem:[#allocation2] sm:$0xff]  ;;  %s1225_s0 = smov [#allocation8]  }
  0x26   :  { %v1258_v2 = vand.u32 127, %v50_v0  ;;  %v54_v3 = vshrl.u32 %v50_v0, 7  ;;  %1065 = vmatprep.subr.mxu1 %v1222_v1  ;;  %1067 = vmatprep.mubr.msk.f32.mxu1 %vm1223_vm0, %v1222_v1  ;;  %v516_v9 = vsel %vm65_vm1, %v64_v7, 0  ;;  %v135_v11 = vand.u32 4294901760, %v67_v8  ;;  %s1019_s2 = sshll.u32 %s1225_s0, 4  ;;  %s1020_s2 = int_to_ptr.vmem [resolvable:$true] %s1019_s2 }
  0x27   :  { %v584_v15 = vand.u32 4294901760, %v516_v9  ;;  %v968_v28 = vand.u32 2147483647, %v1314_v27  ;;  %vm984_vm5 = vcmp.ge.f32.partialorder %v1314_v27, 0.0  ;;  %s1193_s26 = scalar_lea.vmem %s1020_s2, 128  ;;  %p1198_p2 = scmp.lt.s32.totalorder %s1020_s2, %s1020_s2 }
  0x28   :  { %v55_v4 = vmul.u32 16, %v54_v3  ;;  %v136_v14 = vsub.f32 %v67_v8, %v135_v11  ;;  %v52_v49 = vcvt.s32.f32 %v1258_v2  ;;  %p1194_p1 = scmp.ne.s32.totalorder %s1020_s2, %s1193_s26  ;;  %p1199_p3 = scmp.lt.s32.totalorder %s1193_s26, %s1193_s26 }
  0x29   :  { %v585_v21 = vsub.f32 %v516_v9, %v584_v15  ;;  %v969_v29 = vsub.f32 0.0, %v968_v28 }
  0x2a   :  { %vm56_vm2 = vcmp.ge.s32.totalorder %v1258_v2, %v55_v4  ;;  %v57_v5 = vadd.s32 16, %v55_v4  ;;  %v137_v17 = vand.u32 4294901760, %v136_v14  ;;  %p1200_p4 = por %p1199_p3, %p1198_p2 }
  0x2b   :  { %v586_v24 = vand.u32 4294901760, %v585_v21  ;;  %v970_v30 = vmul.f32 1.442695, %v969_v29 }
  0x2c   :  { %vm58_vm3 = vcmp.lt.s32.totalorder %v1258_v2, %v57_v5  ;;  %v138_v19 = vsub.f32 %v136_v14, %v137_v17  ;;  %p1201_p5 = pnand %p1200_p4, %p1194_p1 }
  0x2d   :  { %vm1265_vm4 = vmand %vm56_vm2, %vm58_vm3  ;;  %v587_v25 = vsub.f32 %v585_v21, %v586_v24  ;;  %1127 = vpow2.f32 %v970_v30 }
  0x2e   :  { %1061 = vmatpush3.msk.msra.mxu0 %vm1265_vm4, %v1224_v12  ;;  %v1029_v13 = vsel %vm1265_vm4, 1.0, %v1222_v1  ;;  %v139_v22 = vand.u32 4294901760, %v138_v19 }
  0x2f   :  { %1070 = vmatprep.subr.mxu0 %v1222_v1  ;;  %v177_v16 = vsub.f32 %v1029_v13, %v1029_v13  ;;  %v588_v26 = vand.u32 4294901760, %v587_v25 }
  0x30   :  { %1063 = vmatmul.mubr.f32.vlgmr.msra.gmra.mxu0 %v139_v22 }
  0x31   :  { %v178_v18 = vand.u32 4294901760, %v177_v16  ;;  %1071 = vmatpush3.msra.mxu0 %v177_v16  ;;  %1072 = vmatprep.mubr.msk.f32.mxu0 %vm1223_vm0, %v1222_v1 }
  0x32   :  { %1080 = vmatprep.subr.mxu0 %v1222_v1 }
  0x33   :  { %v179_v20 = vsub.f32 %v177_v16, %v178_v18 }
  0x34   :  { %1073 = vmatmul.mubr.f32.vlgmr.msra.gmra.mxu0 %v136_v14 }
  0x35   :  { %v180_v23 = vand.u32 4294901760, %v179_v20  ;;  %1081 = vmatpush3.msra.mxu0 %v178_v18  ;;  %1082 = vmatprep.mubr.msk.f32.mxu0 %vm1223_vm0, %v1222_v1 }
  0x36   :  { %1090 = vmatprep.subr.mxu0 %v1222_v1 }
  0x37   :  { %1066 = vmatpush3.msra.mxu1 %v180_v23 }
  0x38   :  { %1068 = vmatmul.mubr.f32.vlgmr.msra.gmra.mxu1 %v135_v11  ;;  %1075 = vmatprep.subr.mxu1 %v1222_v1 }
  0x39   :  { %1076 = vmatpush3.msk.msra.mxu1 %vm1265_vm4, %v1224_v12  ;;  %1077 = vmatprep.mubr.msk.f32.mxu1 %vm1223_vm0, %v1222_v1 }
  0x3a   :  { %1085 = vmatprep.subr.mxu1 %v1222_v1  ;;  %1083 = vmatmul.mubr.f32.vlgmr.msra.gmra.mxu0 %v135_v11  ;;  %v1128_v31 = vpop.eup %1127 }
  0x3b   :  { %1091 = vmatpush3.msk.msra.mxu0 %vm1265_vm4, %v1224_v12  ;;  %1092 = vmatprep.mubr.msk.f32.mxu0 %vm1223_vm0, %v1222_v1  ;;  %v972_v32 = vadd.f32 1.0, %v1128_v31  ;;  %v975_v56 = vmul.f32 -0.5, %v1128_v31  ;;  %v978_v6 = vand.u32 2147483647, %v1128_v31 }
  0x3c   :  { %1078 = vmatmul.mubr.f32.vlgmr.msra.gmra.mxu1 %v137_v17  ;;  %1100 = vmatprep.subr.mxu0 %v1222_v1 }
  0x3d   :  { %1086 = vmatpush3.msk.msra.mxu1 %vm1265_vm4, %v1224_v12  ;;  %1087 = vmatprep.mubr.msk.f32.mxu1 %vm1223_vm0, %v1222_v1  ;;  %1129 = vrcp.f32 %v972_v32  ;;  %v976_v3 = vadd.f32 1.0, %v975_v56  ;;  %vm979_vm7 = vcmp.lt.f32.partialorder %v978_v6, 0.0004427343 }
  0x3e   :  { %1095 = vmatprep.subr.mxu1 %v1222_v1  ;;  %1093 = vmatmul.mubr.f32.vlgmr.msra.gmra.mxu0 %v588_v26  ;;  %1131 = vlog2.f32 %v972_v32 }
  0x3f   :  { %1101 = vmatpush3.msra.mxu0 %v177_v16  ;;  %1102 = vmatprep.mubr.msk.f32.mxu0 %vm1223_vm0, %v1222_v1  ;;  %v977_v14 = vmul.f32 %v1128_v31, %v976_v3 }
  0x40   :  { %1088 = vmatmul.mubr.f32.vlgmr.msra.gmra.mxu1 %v135_v11  ;;  %1110 = vmatprep.subr.mxu0 %v1222_v1 }
  0x41   :  { %1096 = vmatpush3.msra.mxu1 %v180_v23  ;;  %1097 = vmatprep.mubr.msk.f32.mxu1 %vm1223_vm0, %v1222_v1 }
  0x42   :  { %1105 = vmatprep.subr.mxu1 %v1222_v1  ;;  %1103 = vmatmul.mubr.f32.vlgmr.msra.gmra.mxu0 %v585_v21 }
  0x43   :  { %1111 = vmatpush3.msra.mxu0 %v178_v18  ;;  %1112 = vmatprep.mubr.msk.f32.mxu0 %vm1223_vm0, %v1222_v1 }
  0x44   :  { %1098 = vmatmul.mubr.f32.vlgmr.msra.gmra.mxu1 %v584_v15 }
  0x45   :  { %1106 = vmatpush3.msk.msra.mxu1 %vm1265_vm4, %v1224_v12  ;;  %1107 = vmatprep.mubr.msk.f32.mxu1 %vm1223_vm0, %v1222_v1 }
  0x46   :  { %1115 = vmatprep.subr.mxu1 %v1222_v1  ;;  %1113 = vmatmul.mubr.f32.vlgmr.msra.gmra.mxu0 %v584_v15 }
  0x48   :  { %1108 = vmatmul.mubr.f32.vlgmr.msra.gmra.mxu1 %v586_v24 }
  0x49   :  { %1116 = vmatpush3.msk.msra.mxu1 %vm1265_vm4, %v1224_v12  ;;  %1117 = vmatprep.mubr.msk.f32.mxu1 %vm1223_vm0, %v1222_v1 }
  0x4a   :  { %v1130_v57 = vpop.eup %1129 }
  0x4b   :  { %v985_v1 = vmul.f32 %v1130_v57, %v1128_v31  ;;  %v1132_v4 = vpop.eup %1131 }
  0x4c   :  { %1118 = vmatmul.mubr.f32.vlgmr.msra.gmra.mxu1 %v584_v15  ;;  %v974_v13 = vmul.f32 0.6931472, %v1132_v4  ;;  %v987_v15 = vmax.f32 %v1314_v27, 0.0 }
  0x4d   :  { %v986_v11 = vsel %vm984_vm5, %v1130_v57, %v985_v1 }
  0x4e   :  { %v980_v19 = vsel %vm979_vm7, %v977_v14, %v974_v13 }
  0xf0   :  { %v141_v33 = vpop.f32.mrf.mxu0 }
  0xf2   :  { %v1064_v36 = vpop.f32.mrf.mxu0 }
  0xf4   :  { %v291_v38 = vpop.f32.mrf.mxu0 }
  0xf6   :  { %v1074_v41 = vpop.f32.mrf.mxu0 }
  0xf8   :  { %v217_v34 = vpop.f32.mrf.mxu1 }
  0xf9   :  { %v218_v35 = vadd.f32 %v217_v34, %v141_v33 }
  0xfa   :  { %v1069_v37 = vpop.f32.mrf.mxu1  ;;  %v439_v44 = vpop.f32.mrf.mxu0 }
  0xfb   :  { %v292_v39 = vadd.f32 %v291_v38, %v218_v35 }
  0xfc   :  { %v365_v40 = vpop.f32.mrf.mxu1  ;;  %v1084_v47 = vpop.f32.mrf.mxu0 }
  0xfd   :  { %v366_v42 = vadd.f32 %v365_v40, %v292_v39 }
  0xfe   :  { %v1079_v43 = vpop.f32.mrf.mxu1  ;;  %v590_v51 = vpop.f32.mrf.mxu0 }
  0xff   :  { %v440_v45 = vadd.f32 %v439_v44, %v366_v42 }
 0x100   :  { %v511_v46 = vpop.f32.mrf.mxu1  ;;  %v1094_v54 = vpop.f32.mrf.mxu0 }
 0x101   :  { %v512_v50 = vadd.f32 %v511_v46, %v440_v45 }
 0x102   :  { %v1089_v48 = vpop.f32.mrf.mxu1  ;;  %v740_v59 = vpop.f32.mrf.mxu0 }
 0x103   :  { %v964_v58 = vsub.f32 %v52_v49, %v512_v50 }
 0x104   :  { %v666_v52 = vpop.f32.mrf.mxu1  ;;  %v1104_v62 = vpop.f32.mrf.mxu0 }
 0x105   :  { %v667_v53 = vadd.f32 %v666_v52, %v590_v51  ;;  %v965_v5 = vand.u32 2147483647, %v964_v58 }
 0x106   :  { %v1099_v55 = vpop.f32.mrf.mxu1  ;;  %v888_v2 = vpop.f32.mrf.mxu0 }
 0x107   :  { %v741_v60 = vadd.f32 %v740_v59, %v667_v53  ;;  %vm966_vm6 = vcmp.lt.f32.partialorder %v965_v5, 0.5 }
 0x108   :  { %v814_v61 = vpop.f32.mrf.mxu1  ;;  %v1114_v9 = vpop.f32.mrf.mxu0 }
 0x109   :  { %v815_v63 = vadd.f32 %v814_v61, %v741_v60 }
 0x10a   :  { %v1109_v0 = vpop.f32.mrf.mxu1 }
 0x10b   :  { %v889_v7 = vadd.f32 %v888_v2, %v815_v63 }
 0x10c   :  { %v960_v8 = vpop.f32.mrf.mxu1 }
 0x10d   :  { %v961_v10 = vadd.f32 %v960_v8, %v889_v7 }
 0x10e   :  { %v1119_v12 = vpop.f32.mrf.mxu1 }
 0x10f   :  { %v967_v16 = vsel %vm966_vm6, %v961_v10, 0.0 }
 0x110   :  { %v988_v17 = vmul.f32 %v967_v16, %v1314_v27  ;;  %v991_v18 = vsub.f32 %v967_v16, %v986_v11 }
 0x112   :  { %v989_v20 = vsub.f32 %v987_v15, %v988_v17  ;;  %v992_v21 = vmul.f32 %v991_v18, %v991_v18 }
 0x114   :  { %v990_v22 = vadd.f32 %v989_v20, %v980_v19 }
 0x116   :  { %v993_v23 = vmul.f32 %v992_v21, %v990_v22 }
 0x118   :  { %1012 = vst [vmem:[#allocation8] sm:$0xff] %v993_v23 }
 0x119   :  { %1204 = shalt.err (!%p1201_p5)
}
 0x11a   :  { %1022 = dma.vmem_to_hbm [thread:$0]  %s1020_s2, 128, %s1327_s3, [#allocation4]  }
 0x11b   :  { %1217 = dma.done.wait [#allocation4], 128  }
 0x11c   :  { %1218 = vsyncadd [#allocation4], 4294967168 }
 0x11d   :  { %1026 = vsyncpa [#allocation3], 1 }
 0x11e   :  { %1027 = vsyncpa [#allocation6], 1 }
 0x11f   :  { %1028 = vsyncpa [#allocation4], 1 }

</bundles_post_ra>
